<compile_context>
chip_gen: v7x
topology: tpu7x:2x2x1
jax: 0.10.0
libtpu: 0.0.40
codegen_flags: <defaults>
</compile_context>

<pallas_src>
import functools

import jax
import jax.numpy as jnp
from jax.experimental import pallas as pl
from jax.experimental.pallas import tpu as pltpu

LANE = 128


def _round_up(x, m):
    return ((x + m - 1) // m) * m


# ----------------------------------------------------------------------------
# Kernel: fused 4-layer MLP  (tanh, tanh, tanh, identity)
# ----------------------------------------------------------------------------
def dynamics_mlp_kernel(x_ref,
                        w0_ref, b0_ref,
                        w1_ref, b1_ref,
                        w2_ref, b2_ref,
                        w3_ref, b3_ref,
                        o_ref,
                        *, act_dtype):
    # MXU matmuls take bf16 operands, accumulate f32 (preferred_element_type).
    # Bias add runs in f32 on the VPU; tanh runs in `act_dtype`
    # (bf16 on v6e/v7x -> 2x EUP throughput, f32 on v5e which has no bf16 EUP).
    # The straight dot->tanh->dot chain is left to the LLO scheduler to overlap
    # MXU drain with EUP pushes across M sub-tiles of the (large) batch block.

    def linear(h, w_ref, b_ref):
        return jnp.dot(h, w_ref[...], preferred_element_type=jnp.float32) + b_ref[...]

    def act(h, next_operand_dtype):
        return jnp.tanh(h.astype(act_dtype)).astype(next_operand_dtype)

    h = act(linear(x_ref[...], w0_ref, b0_ref), w1_ref.dtype)
    h = act(linear(h, w1_ref, b1_ref), w2_ref.dtype)
    h = act(linear(h, w2_ref, b2_ref), w3_ref.dtype)
    o_ref[...] = linear(h, w3_ref, b3_ref).astype(o_ref.dtype)


# ----------------------------------------------------------------------------
# Parameter preparation: pad feature dims, cast weights bf16
# ----------------------------------------------------------------------------
def prepare_dynamics_params(params, weight_dtype=jnp.bfloat16):
    """params: list of (W(in,out) f32, b(1,out) f32) — PyTorch W transposed.

    Layer-0 K dim is only rounded to 16 (bf16 sublane packing), NOT to 128:
    the x block uses the full last dim, which Pallas allows, and this avoids
    multiplying mostly-zero padding on the MXU for the first layer.
    Hidden/output dims are rounded to 128 lanes so everything else is unmasked.
    """
    in_dim = params[0][0].shape[0]
    out_dim = params[-1][0].shape[1]

    row_sizes = [_round_up(in_dim, 16)] + \
                [_round_up(w.shape[1], LANE) for (w, _) in params[:-1]]
    col_sizes = [_round_up(w.shape[1], LANE) for (w, _) in params[:-1]] + \
                [_round_up(out_dim, LANE)]

    padded = []
    for (w, b), rows, cols in zip(params, row_sizes, col_sizes):
        wp = jnp.zeros((rows, cols), weight_dtype).at[:w.shape[0], :w.shape[1]].set(
            w.astype(weight_dtype))
        bp = jnp.zeros((1, cols), jnp.float32).at[:, :b.shape[1]].set(
            b.astype(jnp.float32))                    # biases stay f32 (VPU add)
        padded.append((wp, bp))

    return {
        "params": padded,
        "in_dim": in_dim,
        "out_dim": out_dim,
        "in_pad": row_sizes[0],
        "out_pad": col_sizes[-1],
    }


# ----------------------------------------------------------------------------
# Chip-dependent activation dtype (bf16 EUP only on v6e / v7x)
# ----------------------------------------------------------------------------
def _activation_dtype():
    try:
        kind = jax.devices()[0].device_kind.lower()
    except Exception:
        kind = ""
    if ("v6" in kind) or ("v7" in kind):
        return jnp.bfloat16
    return jnp.float32    # conservative default (correct everywhere)


# ----------------------------------------------------------------------------
# Batch-tile selection
# ----------------------------------------------------------------------------
def _choose_bm(B, block_m):
    """Pick the batch tile.

    - small batches: one (16-rounded) tile, no pipeline overhead.
    - B > 256: tiles are multiples of 256 (clean MXU M mapping), capped at
      block_m AND capped so the grid has at least 2 steps — keeps both v7x
      TensorCores busy under dimension_semantics=('parallel',).
    """
    B16 = _round_up(B, 16)
    if B16 <= 256:
        return B16
    half = _round_up((B16 + 1) // 2, 256)
    return max(256, min(_round_up(block_m, 256), half))


# ----------------------------------------------------------------------------
# Wrapper
# ----------------------------------------------------------------------------
def dynamics_forward(x, prepped, *, block_m=1024):
    """x: (B, in_dim) float32; prepped: output of prepare_dynamics_params."""
    B, in_dim = x.shape
    assert in_dim == prepped["in_dim"], "input feature dim mismatch"

    (w0, b0), (w1, b1), (w2, b2), (w3, b3) = prepped["params"]
    in_pad, out_pad, out_dim = prepped["in_pad"], prepped["out_pad"], prepped["out_dim"]
    wdt = w0.dtype
    act_dtype = _activation_dtype()

    bm = _choose_bm(B, block_m)
    B_pad = _round_up(B, bm)
    grid = (B_pad // bm,)

    # Pad batch rows (+ first-layer K to its 16-multiple); cast to MXU operand dtype.
    x_pad = jnp.zeros((B_pad, in_pad), wdt).at[:B, :in_dim].set(x.astype(wdt))

    def rep(a):
        # full-array block, grid-invariant -> weights stay resident in VMEM
        return pl.BlockSpec(a.shape, lambda i: (0, 0))

    in_specs = [
        # full last dim (= array dim) is legal even though in_pad < 128
        pl.BlockSpec((bm, in_pad), lambda i: (i, 0)),
        rep(w0), rep(b0),
        rep(w1), rep(b1),
        rep(w2), rep(b2),
        rep(w3), rep(b3),
    ]
    out_specs = pl.BlockSpec((bm, out_pad), lambda i: (i, 0))

    flops = 2 * B_pad * (w0.shape[0] * w0.shape[1]
                         + w1.shape[0] * w1.shape[1]
                         + w2.shape[0] * w2.shape[1]
                         + w3.shape[0] * w3.shape[1])
    transcendentals = B_pad * (w0.shape[1] + w1.shape[1] + w2.shape[1])
    bytes_accessed = (x_pad.size * x_pad.dtype.itemsize
                      + sum(w.size * w.dtype.itemsize + b.size * b.dtype.itemsize
                            for (w, b) in prepped["params"])
                      + B_pad * out_pad * 4)

    kernel = functools.partial(dynamics_mlp_kernel, act_dtype=act_dtype)

    y_pad = pl.pallas_call(
        kernel,
        out_shape=jax.ShapeDtypeStruct((B_pad, out_pad), jnp.float32),
        grid_spec=pltpu.PrefetchScalarGridSpec(
            num_scalar_prefetch=0,
            grid=grid,
            in_specs=in_specs,
            out_specs=out_specs,
        ),
        compiler_params=pltpu.CompilerParams(
            dimension_semantics=("parallel",)),
        cost_estimate=pl.CostEstimate(
            flops=flops,
            transcendentals=transcendentals,
            bytes_accessed=bytes_accessed),
    )(x_pad, w0, b0, w1, b1, w2, b2, w3, b3)

    return y_pad[:B, :out_dim]


# ----------------------------------------------------------------------------
# Deterministic parameter construction (same shapes as Dynamics.__init__)
# ----------------------------------------------------------------------------
def make_dynamics_params(key, state_shape, action_shape, stack_n=1,
                         stochastic=True, hlayers=(250, 250, 250)):
    in_dim = (state_shape + action_shape) * stack_n
    out_dim = state_shape * (2 if stochastic else 1)
    input_sizes = (in_dim, *hlayers)
    output_sizes = (*hlayers, out_dim)

    params = []
    for isz, osz in zip(input_sizes, output_sizes):
        key, kw, kb = jax.random.split(key, 3)
        # nn.Linear-style init; torch weight is (out, in), we store (in, out).
        bound = 1.0 / jnp.sqrt(jnp.float32(isz))
        w = jax.random.uniform(kw, (isz, osz), jnp.float32, -bound, bound)
        b = jax.random.uniform(kb, (1, osz), jnp.float32, -bound, bound)
        params.append((w, b))
    return params, in_dim, out_dim


# ----------------------------------------------------------------------------
# References
# ----------------------------------------------------------------------------
def dynamics_forward_ref_f32(x, params):
    """Pure-f32 reference of the PyTorch forward (tanh on all but last layer)."""
    h = x
    for (w, b) in params[:-1]:
        h = jnp.tanh(h @ w + b)
    w, b = params[-1]
    return h @ w + b


def dynamics_forward_ref_policy(x, params, act_dtype, weight_dtype=jnp.bfloat16):
    """Reference mirroring the kernel precision policy: bf16 MXU operands,
    f32 accumulation + bias, tanh in `act_dtype`."""
    h = x.astype(weight_dtype)
    for (w, b) in params[:-1]:
        z = jnp.dot(h, w.astype(weight_dtype),
                    preferred_element_type=jnp.float32) + b
        h = jnp.tanh(z.astype(act_dtype)).astype(weight_dtype)
    w, b = params[-1]
    return jnp.dot(h, w.astype(weight_dtype),
                   preferred_element_type=jnp.float32) + b


# ----------------------------------------------------------------------------
if __name__ == "__main__":
    key = jax.random.PRNGKey(0)

    # Small, module-consistent shapes:
    state_shape, action_shape, stack_n = 12, 4, 1
    stochastic = True
    hlayers = (250, 250, 250)          # module default
    batch = 16                         # intentionally NOT a tile multiple of 256

    kp, kx = jax.random.split(key)
    params, in_dim, out_dim = make_dynamics_params(
        kp, state_shape, action_shape, stack_n, stochastic, hlayers)

    prepped = prepare_dynamics_params(params)

    x = jax.random.normal(kx, (batch, in_dim), jnp.float32)

    y = dynamics_forward(x, prepped, block_m=1024)
    y = jax.block_until_ready(y)

    assert y.shape == (batch, out_dim)

    # Check against a reference using the same mixed-precision policy
    # (tolerance covers EUP-vs-XLA tanh rounding when bf16 tanh is in use).
    act_dtype = _activation_dtype()
    y_ref_policy = dynamics_forward_ref_policy(x, params, act_dtype)
    assert jnp.allclose(y, y_ref_policy, atol=1e-2, rtol=1e-2), \
        "mismatch vs precision-policy reference"

    # Loose sanity check against the full-f32 PyTorch-equivalent forward.
    y_ref_f32 = dynamics_forward_ref_f32(x, params)
    assert jnp.allclose(y, y_ref_f32, atol=5e-2, rtol=5e-2), \
        "mismatch vs f32 reference"

    print("KERNEL_OK")
</pallas_src>

<mosaic_0001>
module attributes {stable_mosaic.version = 11 : i64} {
  func.func @dynamics_mlp_kernel(%arg0: i32, %arg1: memref<16x16xbf16, #tpu.memory_space<vmem>>, %arg2: memref<16x256xbf16, #tpu.memory_space<vmem>>, %arg3: memref<1x256xf32, #tpu.memory_space<vmem>>, %arg4: memref<256x256xbf16, #tpu.memory_space<vmem>>, %arg5: memref<1x256xf32, #tpu.memory_space<vmem>>, %arg6: memref<256x256xbf16, #tpu.memory_space<vmem>>, %arg7: memref<1x256xf32, #tpu.memory_space<vmem>>, %arg8: memref<256x128xbf16, #tpu.memory_space<vmem>>, %arg9: memref<1x128xf32, #tpu.memory_space<vmem>>, %arg10: memref<16x128xf32, #tpu.memory_space<vmem>>) attributes {dimension_semantics = [#tpu.dimension_semantics<parallel>], iteration_bounds = array<i64: 1>, scalar_prefetch = 0 : i64, scratch_operands = 0 : i64, tpu.core_type = #tpu.core_type<tc>, window_params = [{transform_indices = @transform_0, window_bounds = array<i64: 16, 16>}, {pipeline_mode = #tpu.pipeline_mode<synchronous>, transform_indices = @transform_1, window_bounds = array<i64: 16, 256>}, {pipeline_mode = #tpu.pipeline_mode<synchronous>, transform_indices = @transform_2, window_bounds = array<i64: 1, 256>}, {pipeline_mode = #tpu.pipeline_mode<synchronous>, transform_indices = @transform_3, window_bounds = array<i64: 256, 256>}, {pipeline_mode = #tpu.pipeline_mode<synchronous>, transform_indices = @transform_4, window_bounds = array<i64: 1, 256>}, {pipeline_mode = #tpu.pipeline_mode<synchronous>, transform_indices = @transform_5, window_bounds = array<i64: 256, 256>}, {pipeline_mode = #tpu.pipeline_mode<synchronous>, transform_indices = @transform_6, window_bounds = array<i64: 1, 256>}, {pipeline_mode = #tpu.pipeline_mode<synchronous>, transform_indices = @transform_7, window_bounds = array<i64: 256, 128>}, {pipeline_mode = #tpu.pipeline_mode<synchronous>, transform_indices = @transform_8, window_bounds = array<i64: 1, 128>}, {transform_indices = @transform_9, window_bounds = array<i64: 16, 128>}]} {
    %c0 = arith.constant 0 : index
    %c0_0 = arith.constant 0 : index
    %0 = vector.load %arg1[%c0, %c0_0] : memref<16x16xbf16, #tpu.memory_space<vmem>>, vector<16x16xbf16>
    %c0_1 = arith.constant 0 : index
    %c0_2 = arith.constant 0 : index
    %1 = vector.load %arg2[%c0_1, %c0_2] : memref<16x256xbf16, #tpu.memory_space<vmem>>, vector<16x256xbf16>
    %cst = arith.constant dense<0.000000e+00> : vector<16x256xf32>
    %2 = tpu.matmul %0, %1, %cst {dimension_numbers = #tpu.dot_dimension_numbers<[1], [0], [0], [1], [0, 0, 1, 1], [], []>} : vector<16x16xbf16>, vector<16x256xbf16>, vector<16x256xf32> -> vector<16x256xf32>
    %c0_3 = arith.constant 0 : index
    %c0_4 = arith.constant 0 : index
    %3 = vector.load %arg3[%c0_3, %c0_4] : memref<1x256xf32, #tpu.memory_space<vmem>>, vector<1x256xf32>
    %4 = vector.broadcast %3 : vector<1x256xf32> to vector<16x256xf32>
    %5 = arith.addf %2, %4 : vector<16x256xf32>
    %6 = math.tanh %5 : vector<16x256xf32>
    %7 = arith.truncf %6 : vector<16x256xf32> to vector<16x256xbf16>
    %c0_5 = arith.constant 0 : index
    %c0_6 = arith.constant 0 : index
    %8 = vector.load %arg4[%c0_5, %c0_6] : memref<256x256xbf16, #tpu.memory_space<vmem>>, vector<256x256xbf16>
    %cst_7 = arith.constant dense<0.000000e+00> : vector<16x256xf32>
    %9 = tpu.matmul %7, %8, %cst_7 {dimension_numbers = #tpu.dot_dimension_numbers<[1], [0], [0], [1], [0, 0, 1, 1], [], []>} : vector<16x256xbf16>, vector<256x256xbf16>, vector<16x256xf32> -> vector<16x256xf32>
    %c0_8 = arith.constant 0 : index
    %c0_9 = arith.constant 0 : index
    %10 = vector.load %arg5[%c0_8, %c0_9] : memref<1x256xf32, #tpu.memory_space<vmem>>, vector<1x256xf32>
    %11 = vector.broadcast %10 : vector<1x256xf32> to vector<16x256xf32>
    %12 = arith.addf %9, %11 : vector<16x256xf32>
    %13 = math.tanh %12 : vector<16x256xf32>
    %14 = arith.truncf %13 : vector<16x256xf32> to vector<16x256xbf16>
    %c0_10 = arith.constant 0 : index
    %c0_11 = arith.constant 0 : index
    %15 = vector.load %arg6[%c0_10, %c0_11] : memref<256x256xbf16, #tpu.memory_space<vmem>>, vector<256x256xbf16>
    %cst_12 = arith.constant dense<0.000000e+00> : vector<16x256xf32>
    %16 = tpu.matmul %14, %15, %cst_12 {dimension_numbers = #tpu.dot_dimension_numbers<[1], [0], [0], [1], [0, 0, 1, 1], [], []>} : vector<16x256xbf16>, vector<256x256xbf16>, vector<16x256xf32> -> vector<16x256xf32>
    %c0_13 = arith.constant 0 : index
    %c0_14 = arith.constant 0 : index
    %17 = vector.load %arg7[%c0_13, %c0_14] : memref<1x256xf32, #tpu.memory_space<vmem>>, vector<1x256xf32>
    %18 = vector.broadcast %17 : vector<1x256xf32> to vector<16x256xf32>
    %19 = arith.addf %16, %18 : vector<16x256xf32>
    %20 = math.tanh %19 : vector<16x256xf32>
    %21 = arith.truncf %20 : vector<16x256xf32> to vector<16x256xbf16>
    %c0_15 = arith.constant 0 : index
    %c0_16 = arith.constant 0 : index
    %22 = vector.load %arg8[%c0_15, %c0_16] : memref<256x128xbf16, #tpu.memory_space<vmem>>, vector<256x128xbf16>
    %cst_17 = arith.constant dense<0.000000e+00> : vector<16x128xf32>
    %23 = tpu.matmul %21, %22, %cst_17 {dimension_numbers = #tpu.dot_dimension_numbers<[1], [0], [0], [1], [0, 0, 1, 1], [], []>} : vector<16x256xbf16>, vector<256x128xbf16>, vector<16x128xf32> -> vector<16x128xf32>
    %c0_18 = arith.constant 0 : index
    %c0_19 = arith.constant 0 : index
    %24 = vector.load %arg9[%c0_18, %c0_19] : memref<1x128xf32, #tpu.memory_space<vmem>>, vector<1x128xf32>
    %25 = vector.broadcast %24 : vector<1x128xf32> to vector<16x128xf32>
    %26 = arith.addf %23, %25 : vector<16x128xf32>
    %c0_20 = arith.constant 0 : index
    %c0_21 = arith.constant 0 : index
    %27 = vector.load %arg10[%c0_20, %c0_21] : memref<16x128xf32, #tpu.memory_space<vmem>>, vector<16x128xf32>
    tpu.vector_store %arg10[%c0_20, %c0_21], %26 {strides = array<i32>} : memref<16x128xf32, #tpu.memory_space<vmem>>, vector<16x128xf32>,
    return
  }
  func.func @transform_0(%arg0: i32) -> (i32, i32) {
    %c0_i32 = arith.constant 0 : i32
    %c0_i32_0 = arith.constant 0 : i32
    return %arg0, %c0_i32 : i32, i32
  }
  func.func @transform_1(%arg0: i32) -> (i32, i32) {
    %c0_i32 = arith.constant 0 : i32
    %c0_i32_0 = arith.constant 0 : i32
    %c0_i32_1 = arith.constant 0 : i32
    return %c0_i32, %c0_i32_0 : i32, i32
  }
  func.func @transform_2(%arg0: i32) -> (i32, i32) {
    %c0_i32 = arith.constant 0 : i32
    %c0_i32_0 = arith.constant 0 : i32
    %c0_i32_1 = arith.constant 0 : i32
    return %c0_i32, %c0_i32_0 : i32, i32
  }
  func.func @transform_3(%arg0: i32) -> (i32, i32) {
    %c0_i32 = arith.constant 0 : i32
    %c0_i32_0 = arith.constant 0 : i32
    %c0_i32_1 = arith.constant 0 : i32
    return %c0_i32, %c0_i32_0 : i32, i32
  }
  func.func @transform_4(%arg0: i32) -> (i32, i32) {
    %c0_i32 = arith.constant 0 : i32
    %c0_i32_0 = arith.constant 0 : i32
    %c0_i32_1 = arith.constant 0 : i32
    return %c0_i32, %c0_i32_0 : i32, i32
  }
  func.func @transform_5(%arg0: i32) -> (i32, i32) {
    %c0_i32 = arith.constant 0 : i32
    %c0_i32_0 = arith.constant 0 : i32
    %c0_i32_1 = arith.constant 0 : i32
    return %c0_i32, %c0_i32_0 : i32, i32
  }
  func.func @transform_6(%arg0: i32) -> (i32, i32) {
    %c0_i32 = arith.constant 0 : i32
    %c0_i32_0 = arith.constant 0 : i32
    %c0_i32_1 = arith.constant 0 : i32
    return %c0_i32, %c0_i32_0 : i32, i32
  }
  func.func @transform_7(%arg0: i32) -> (i32, i32) {
    %c0_i32 = arith.constant 0 : i32
    %c0_i32_0 = arith.constant 0 : i32
    %c0_i32_1 = arith.constant 0 : i32
    return %c0_i32, %c0_i32_0 : i32, i32
  }
  func.func @transform_8(%arg0: i32) -> (i32, i32) {
    %c0_i32 = arith.constant 0 : i32
    %c0_i32_0 = arith.constant 0 : i32
    %c0_i32_1 = arith.constant 0 : i32
    return %c0_i32, %c0_i32_0 : i32, i32
  }
  func.func @transform_9(%arg0: i32) -> (i32, i32) {
    %c0_i32 = arith.constant 0 : i32
    %c0_i32_0 = arith.constant 0 : i32
    return %arg0, %c0_i32 : i32, i32
  }
}

</mosaic_0001>

<bundles_post_ra>
// kernel: tpu_custom_call.1
= control target key start
LH: loop header
LB: loop body
LE: loop exit
PB: predicated region body
PF: predicated region fallthrough
CT: control target
= control target key end

     0   :  { %14 = vsyncpa [#allocation3], 0  ;;  %s1460_s0 = inlined_call_operand.hbm [shape: bf16[16,16], index: 0, kind: input, shape index: {}]   ;;  %s1461_s1 = inlined_call_operand.hbm [shape: bf16[16,256], index: 1, kind: input, shape index: {}]   ;;  %s1462_s2 = inlined_call_operand.vmem [shape: f32[1,256], index: 2, kind: input, shape index: {}]   ;;  %s1463_s3 = inlined_call_operand.hbm [shape: bf16[256,256], index: 3, kind: input, shape index: {}]   ;;  %s1464_s4 = inlined_call_operand.vmem [shape: f32[1,256], index: 4, kind: input, shape index: {}]   ;;  %s1465_s5 = inlined_call_operand.hbm [shape: bf16[256,256], index: 5, kind: input, shape index: {}]   ;;  %s1466_s6 = inlined_call_operand.vmem [shape: f32[1,256], index: 6, kind: input, shape index: {}]   ;;  %s1467_s7 = inlined_call_operand.hbm [shape: bf16[256,128], index: 7, kind: input, shape index: {}]   ;;  %s1468_s8 = inlined_call_operand.vmem [shape: f32[1,128], index: 8, kind: input, shape index: {}]   ;;  %s1469_s9 = inlined_call_operand.hbm [shape: f32[16,128], index: 9, kind: output, shape index: {}]  }
   0x1   :  { %15 = vsyncpa [#allocation6], 0 }
   0x2   :  { %16 = vsyncpa [#allocation9], 0 }
   0x3   :  { %17 = vsyncpa [#allocation4], 0  ;;  %s1287_s30 = smov [#allocation5]   ;;  %s1147_s13 = scalar_lea.hbm %s1461_s1, 256 }
   0x4   :  { %s35_s10 = sshll.u32 %s1287_s30, 4  ;;  %p1148_p0 = scmp.ne.s32.totalorder %s1461_s1, %s1147_s13  ;;  %s36_s10 = int_to_ptr.vmem [resolvable:$true] %s35_s10 }
   0x5   :  { %p1151_p1 = scmp.lt.u32.totalorder %s1147_s13, %s1461_s1 }
   0x7   :  { %p1153_p2 = pnand %p1151_p1, %p1148_p0 }
   0x9   :  { %1156 = shalt.err (!%p1153_p2)
}
   0xa   :  { %s1157_s18 = scalar_lea.vmem %s36_s10, 256  ;;  %p1162_p4 = scmp.lt.s32.totalorder %s36_s10, %s36_s10 }
   0xb   :  { %p1158_p3 = scmp.ne.s32.totalorder %s36_s10, %s1157_s18  ;;  %p1163_p5 = scmp.lt.s32.totalorder %s1157_s18, %s1157_s18 }
   0xd   :  { %p1164_p6 = por %p1163_p5, %p1162_p4 }
   0xf   :  { %p1165_p7 = pnand %p1164_p6, %p1158_p3 }
  0x11   :  { %1168 = shalt.err (!%p1165_p7)
}
  0x12   :  { %s1288_s19 = smov 128   ;;  %s1289_s20 = smov 8  }
  0x13   :  { %41 = dma.hbm_to_vmem [thread:$0]  %s1461_s1, 256, %s36_s10, [#allocation6], %s1288_s19, %s1288_s19, %s1289_s20  }
  0x14   :  { %s1290_s23 = smov [#allocation8]   ;;  %s1291_s25 = smov [#allocation2]  }
  0x15   :  { %s63_s24 = sshll.u32 %s1290_s23, 4  ;;  %s23_s26 = sshll.u32 %s1291_s25, 4  ;;  %s64_s24 = int_to_ptr.vmem [resolvable:$true] %s63_s24  ;;  %s24_s26 = int_to_ptr.vmem [resolvable:$true] %s23_s26 }
  0x16   :  { %s1169_s29 = scalar_lea.hbm %s1465_s5, 4096 }
  0x17   :  { %p1170_p8 = scmp.ne.s32.totalorder %s1465_s5, %s1169_s29  ;;  %p1173_p9 = scmp.lt.u32.totalorder %s1169_s29, %s1465_s5 }
  0x19   :  { %p1175_p10 = pnand %p1173_p9, %p1170_p8 }
  0x1b   :  { %1178 = shalt.err (!%p1175_p10)
}
  0x1c   :  { %s1179_s1 = scalar_lea.vmem %s64_s24, 4096  ;;  %p1184_p12 = scmp.lt.s32.totalorder %s64_s24, %s64_s24 }
  0x1d   :  { %p1180_p11 = scmp.ne.s32.totalorder %s64_s24, %s1179_s1  ;;  %p1185_p13 = scmp.lt.s32.totalorder %s1179_s1, %s1179_s1 }
  0x1f   :  { %p1186_p0 = por %p1185_p13, %p1184_p12 }
  0x21   :  { %p1187_p1 = pnand %p1186_p0, %p1180_p11 }
  0x23   :  { %1190 = shalt.err (!%p1187_p1)
}
  0x24   :  { %69 = dma.hbm_to_vmem [thread:$0]  %s1465_s5, 4096, %s64_s24, [#allocation9], %s1288_s19, %s1288_s19, %s1289_s20  }
  0x25   :  { %s1191_s17 = scalar_lea.hbm %s1460_s0, 128 }
  0x26   :  { %p1192_p2 = scmp.ne.s32.totalorder %s1460_s0, %s1191_s17  ;;  %p1195_p3 = scmp.lt.u32.totalorder %s1191_s17, %s1460_s0 }
  0x28   :  { %p1197_p4 = pnand %p1195_p3, %p1192_p2 }
  0x2a   :  { %1200 = shalt.err (!%p1197_p4)
}
  0x2b   :  { %s1201_s25 = scalar_lea.vmem %s24_s26, 128  ;;  %p1206_p6 = scmp.lt.s32.totalorder %s24_s26, %s24_s26 }
  0x2c   :  { %p1202_p5 = scmp.ne.s32.totalorder %s24_s26, %s1201_s25  ;;  %p1207_p7 = scmp.lt.s32.totalorder %s1201_s25, %s1201_s25 }
  0x2e   :  { %p1208_p8 = por %p1207_p7, %p1206_p6 }
  0x30   :  { %p1209_p9 = pnand %p1208_p8, %p1202_p5 }
  0x32   :  { %1212 = shalt.err (!%p1209_p9)
}
  0x33   :  { %s1292_s5 = smov 64   ;;  %s1293_s24 = smov 4  }
  0x34   :  { %29 = dma.hbm_to_vmem [thread:$0]  %s1460_s0, 128, %s24_s26, [#allocation3], %s1292_s5, %s1292_s5, %s1293_s24  }
  0x35   :  { %s1294_s29 = smov [#allocation7]   ;;  %s1295_s11 = smov [#allocation10]  }
  0x36   :  { %s49_s30 = sshll.u32 %s1294_s29, 4  ;;  %s77_s12 = sshll.u32 %s1295_s11, 4  ;;  %s50_s30 = int_to_ptr.vmem [resolvable:$true] %s49_s30  ;;  %s78_s12 = int_to_ptr.vmem [resolvable:$true] %s77_s12 }
  0x37   :  { %s1213_s10 = scalar_lea.hbm %s1463_s3, 4096 }
  0x38   :  { %p1214_p10 = scmp.ne.s32.totalorder %s1463_s3, %s1213_s10  ;;  %p1217_p11 = scmp.lt.u32.totalorder %s1213_s10, %s1463_s3 }
  0x3a   :  { %p1219_p12 = pnand %p1217_p11, %p1214_p10 }
  0x3c   :  { %1222 = shalt.err (!%p1219_p12)
}
  0x3d   :  { %s1223_s0 = scalar_lea.vmem %s50_s30, 4096  ;;  %p1228_p0 = scmp.lt.s32.totalorder %s50_s30, %s50_s30 }
  0x3e   :  { %p1224_p13 = scmp.ne.s32.totalorder %s50_s30, %s1223_s0  ;;  %p1229_p1 = scmp.lt.s32.totalorder %s1223_s0, %s1223_s0 }
  0x40   :  { %p1230_p2 = por %p1229_p1, %p1228_p0 }
  0x42   :  { %p1231_p3 = pnand %p1230_p2, %p1224_p13 }
  0x44   :  { %1234 = shalt.err (!%p1231_p3)
}
  0x45   :  { %55 = dma.hbm_to_vmem [thread:$0]  %s1463_s3, 4096, %s50_s30, [#allocation6], %s1288_s19, %s1288_s19, %s1289_s20  }
  0x46   :  { %s1235_s23 = scalar_lea.hbm %s1467_s7, 2048 }
  0x47   :  { %p1236_p4 = scmp.ne.s32.totalorder %s1467_s7, %s1235_s23  ;;  %p1239_p5 = scmp.lt.u32.totalorder %s1235_s23, %s1467_s7 }
  0x49   :  { %p1241_p6 = pnand %p1239_p5, %p1236_p4 }
  0x4b   :  { %1244 = shalt.err (!%p1241_p6)
}
  0x4c   :  { %s1245_s11 = scalar_lea.vmem %s78_s12, 2048  ;;  %p1250_p8 = scmp.lt.s32.totalorder %s78_s12, %s78_s12 }
  0x4d   :  { %p1246_p7 = scmp.ne.s32.totalorder %s78_s12, %s1245_s11  ;;  %p1251_p9 = scmp.lt.s32.totalorder %s1245_s11, %s1245_s11 }
  0x4f   :  { %p1252_p10 = por %p1251_p9, %p1250_p8 }
  0x51   :  { %p1253_p11 = pnand %p1252_p10, %p1246_p7 }
  0x53   :  { %1256 = shalt.err (!%p1253_p11)
}
  0x54   :  { %83 = dma.hbm_to_vmem [thread:$0]  %s1467_s7, 2048, %s78_s12, [#allocation9], %s1292_s5, %s1292_s5, %s1293_s24  }
  0x55   :  { %1279 = dma.done.wait [#allocation3], 128  }
  0x56   :  { %1280 = vsyncadd [#allocation3], 4294967168 }
  0x57   :  { %1281 = dma.done.wait [#allocation6], 4352  }
  0x58   :  { %1282 = vsyncadd [#allocation6], 4294962944 }
  0x59   :  { %1283 = dma.done.wait [#allocation9], 6144  }
  0x5a   :  { %1284 = vsyncadd [#allocation9], 4294961152  ;;  %v1296_v0 = vmov 0   ;;  %v1007_v1 = vld [vmem:[#allocation5 + $0x4] ss:$8 sps:$4 sm:$0xff]   ;;  %v1010_v3 = vld [vmem:[#allocation2] sm:$0xff]   ;;  %v108_v58 = vlaneseq }
  0x5b   :  { %169 = vmatprep.mubr.bf16.mxu0 %v1296_v0  ;;  %v1009_v2 = vld [vmem:[#allocation5] ss:$8 sps:$4 sm:$0xff]   ;;  %137 = vmatprep.subr.bf16.mxu0 %v1007_v1  ;;  %vm133_vm0 = vcmask 130048   ;;  %v1011_v4 = vld [vmem:[#allocation7 + $0x4] ss:$8 sps:$4 sm:$0xff]   ;;  %s1297_s1 = smov [#allocation11]  }
  0x5c   :  { %138 = vmatpush1.bf16.msra.mxu0 %v1009_v2  ;;  %v1013_v5 = vld [vmem:[#allocation7] ss:$8 sps:$4 sm:$0xff]   ;;  %v1014_v6 = vld [vmem:[#allocation7 + $0x14] ss:$8 sps:$4 sm:$0xff]   ;;  %390 = vmatprep.subr.bf16.mxu1 %v1011_v4  ;;  %v1016_v7 = vld [vmem:[#allocation7 + $0x10] ss:$8 sps:$4 sm:$0xff]  }
  0x5d   :  { %391 = vmatpush1.bf16.msra.mxu1 %v1013_v5  ;;  %v1017_v8 = vld [vmem:[#allocation7 + $0x24] ss:$8 sps:$4 sm:$0xff]   ;;  %v1019_v9 = vld [vmem:[#allocation7 + $0x20] ss:$8 sps:$4 sm:$0xff]   ;;  %v1020_v10 = vld [vmem:[#allocation7 + $0x34] ss:$8 sps:$4 sm:$0xff]  }
  0x5e   :  { %392 = vmatprep.subr.bf16.mxu1 %v1014_v6  ;;  %v1022_v11 = vld [vmem:[#allocation7 + $0x30] ss:$8 sps:$4 sm:$0xff]   ;;  %v1023_v12 = vld [vmem:[#allocation7 + $0x44] ss:$8 sps:$4 sm:$0xff]   ;;  %v1025_v13 = vld [vmem:[#allocation7 + $0x40] ss:$8 sps:$4 sm:$0xff]  }
  0x5f   :  { %892 = vmatmul.mubr.msk.bf16.vlgmr.msra.gmra.mrb[0].mxu0 %vm133_vm0, %v1010_v3  ;;  %v1026_v14 = vld [vmem:[#allocation7 + $0x54] ss:$8 sps:$4 sm:$0xff]   ;;  %v1028_v15 = vld [vmem:[#allocation7 + $0x50] ss:$8 sps:$4 sm:$0xff]   ;;  %v1029_v16 = vld [vmem:[#allocation7 + $0x64] ss:$8 sps:$4 sm:$0xff]  }
  0x60   :  { %v1031_v17 = vld [vmem:[#allocation7 + $0x60] ss:$8 sps:$4 sm:$0xff]   ;;  %v1032_v18 = vld [vmem:[#allocation7 + $0x74] ss:$8 sps:$4 sm:$0xff]   ;;  %v1034_v19 = vld [vmem:[#allocation7 + $0x70] ss:$8 sps:$4 sm:$0xff]  }
  0x61   :  { %393 = vmatpush1.bf16.msra.mxu1 %v1016_v7  ;;  %v1035_v20 = vld [vmem:[#allocation7 + $0x84] ss:$8 sps:$4 sm:$0xff]   ;;  %v1037_v21 = vld [vmem:[#allocation7 + $0x80] ss:$8 sps:$4 sm:$0xff]   ;;  %v1038_v22 = vld [vmem:[#allocation7 + $0x94] ss:$8 sps:$4 sm:$0xff]  }
  0x62   :  { %394 = vmatprep.subr.bf16.mxu1 %v1017_v8  ;;  %v1040_v23 = vld [vmem:[#allocation7 + $0x90] ss:$8 sps:$4 sm:$0xff]   ;;  %v1041_v24 = vld [vmem:[#allocation7 + $0xa4] ss:$8 sps:$4 sm:$0xff]   ;;  %v1043_v25 = vld [vmem:[#allocation7 + $0xa0] ss:$8 sps:$4 sm:$0xff]  }
  0x63   :  { %v1044_v26 = vld [vmem:[#allocation7 + $0xb4] ss:$8 sps:$4 sm:$0xff]   ;;  %v1046_v27 = vld [vmem:[#allocation7 + $0xb0] ss:$8 sps:$4 sm:$0xff]   ;;  %v1047_v28 = vld [vmem:[#allocation7 + $0xc4] ss:$8 sps:$4 sm:$0xff]  }
  0x64   :  { %v1049_v29 = vld [vmem:[#allocation7 + $0xc0] ss:$8 sps:$4 sm:$0xff]   ;;  %v1050_v30 = vld [vmem:[#allocation7 + $0xd4] ss:$8 sps:$4 sm:$0xff]   ;;  %v1052_v31 = vld [vmem:[#allocation7 + $0xd0] ss:$8 sps:$4 sm:$0xff]  }
  0x65   :  { %395 = vmatpush1.bf16.msra.mxu1 %v1019_v9  ;;  %v1053_v32 = vld [vmem:[#allocation7 + $0xe4] ss:$8 sps:$4 sm:$0xff]   ;;  %v1055_v33 = vld [vmem:[#allocation7 + $0xe0] ss:$8 sps:$4 sm:$0xff]   ;;  %v1056_v34 = vld [vmem:[#allocation7 + $0xf4] ss:$8 sps:$4 sm:$0xff]  }
  0x66   :  { %396 = vmatprep.subr.bf16.mxu1 %v1020_v10  ;;  %v1058_v35 = vld [vmem:[#allocation7 + $0xf0] ss:$8 sps:$4 sm:$0xff]   ;;  %v1059_v36 = vld [vmem:[#allocation8] ss:$8 sps:$4 sm:$0xff]   ;;  %v1061_v37 = vld [vmem:[#allocation8 + $0x4] ss:$8 sps:$4 sm:$0xff]  }
  0x67   :  { %v1064_v38 = vld [vmem:[#allocation8 + $0x14] ss:$8 sps:$4 sm:$0xff]   ;;  %643 = vmatprep.subr.bf16.mxu0 %v1061_v37  ;;  %v1062_v39 = vld [vmem:[#allocation8 + $0x10] ss:$8 sps:$4 sm:$0xff]   ;;  %v1067_v40 = vld [vmem:[#allocation8 + $0x24] ss:$8 sps:$4 sm:$0xff]  }
  0x68   :  { %644 = vmatpush1.bf16.msra.mxu0 %v1059_v36  ;;  %v1065_v41 = vld [vmem:[#allocation8 + $0x20] ss:$8 sps:$4 sm:$0xff]   ;;  %v1070_v42 = vld [vmem:[#allocation8 + $0x34] ss:$8 sps:$4 sm:$0xff]   ;;  %v1068_v43 = vld [vmem:[#allocation8 + $0x30] ss:$8 sps:$4 sm:$0xff]  }
  0x69   :  { %397 = vmatpush1.bf16.msra.mxu1 %v1022_v11  ;;  %645 = vmatprep.subr.bf16.mxu0 %v1064_v38  ;;  %v1073_v44 = vld [vmem:[#allocation8 + $0x44] ss:$8 sps:$4 sm:$0xff]   ;;  %v1071_v45 = vld [vmem:[#allocation8 + $0x40] ss:$8 sps:$4 sm:$0xff]   ;;  %v1076_v46 = vld [vmem:[#allocation8 + $0x54] ss:$8 sps:$4 sm:$0xff]  }
  0x6a   :  { %398 = vmatprep.subr.bf16.mxu1 %v1023_v12  ;;  %v1074_v47 = vld [vmem:[#allocation8 + $0x50] ss:$8 sps:$4 sm:$0xff]   ;;  %v1079_v48 = vld [vmem:[#allocation8 + $0x64] ss:$8 sps:$4 sm:$0xff]   ;;  %v1077_v49 = vld [vmem:[#allocation8 + $0x60] ss:$8 sps:$4 sm:$0xff]  }
  0x6b   :  { %v1082_v50 = vld [vmem:[#allocation8 + $0x74] ss:$8 sps:$4 sm:$0xff]   ;;  %v1080_v51 = vld [vmem:[#allocation8 + $0x70] ss:$8 sps:$4 sm:$0xff]   ;;  %v1085_v52 = vld [vmem:[#allocation8 + $0x84] ss:$8 sps:$4 sm:$0xff]  }
  0x6c   :  { %646 = vmatpush1.bf16.msra.mxu0 %v1062_v39  ;;  %v1083_v53 = vld [vmem:[#allocation8 + $0x80] ss:$8 sps:$4 sm:$0xff]   ;;  %v1088_v54 = vld [vmem:[#allocation8 + $0x94] ss:$8 sps:$4 sm:$0xff]   ;;  %v1086_v55 = vld [vmem:[#allocation8 + $0x90] ss:$8 sps:$4 sm:$0xff]  }
  0x6d   :  { %399 = vmatpush1.bf16.msra.mxu1 %v1025_v13  ;;  %647 = vmatprep.subr.bf16.mxu0 %v1067_v40  ;;  %v1091_v56 = vld [vmem:[#allocation8 + $0xa4] ss:$8 sps:$4 sm:$0xff]   ;;  %v1089_v57 = vld [vmem:[#allocation8 + $0xa0] ss:$8 sps:$4 sm:$0xff]   ;;  %v109_v59 = vshrl.u32 %v108_v58, 7  ;;  %s875_s10 = sshll.u32 %s1297_s1, 4  ;;  %s876_s10 = int_to_ptr.vmem [resolvable:$true] %s875_s10 }
  0x6e   :  { %400 = vmatprep.subr.bf16.mxu1 %v1026_v14  ;;  %v106_v61 = vld [vmem:[%s1462_s2] sm:$0x3]  ;;  %s1257_s14 = scalar_lea.vmem %s876_s10, 256  ;;  %p1262_p13 = scmp.lt.s32.totalorder %s876_s10, %s876_s10 }
  0x6f   :  { %v1423_v60 = vsub.s32 0, %v109_v59  ;;  %v1428_v62 = vsub.s32 1, %v109_v59  ;;  %v471_v58 = vld [vmem:[%s1466_s6] sm:$0x3]  ;;  %p1258_p12 = scmp.ne.s32.totalorder %s876_s10, %s1257_s14  ;;  %p1263_p0 = scmp.lt.s32.totalorder %s1257_s14, %s1257_s14 }
  0x70   :  { %648 = vmatpush1.bf16.msra.mxu0 %v1065_v41 }
  0x71   :  { %401 = vmatpush1.bf16.msra.mxu1 %v1028_v15  ;;  %649 = vmatprep.subr.bf16.mxu0 %v1070_v42  ;;  %v111_v63 = vrot.slane %v106_v61, %v1423_v60  ;;  %v115_v0 = vrot.slane %v106_v61, %v1428_v62  ;;  %v1094_v15 = vld [vmem:[#allocation8 + $0xb4] ss:$8 sps:$4 sm:$0xff]   ;;  %v476_v59 = vrot.slane %v471_v58, %v1423_v60  ;;  %p1264_p1 = por %p1263_p0, %p1262_p13 }
  0x72   :  { %402 = vmatprep.subr.bf16.mxu1 %v1029_v16  ;;  %v1092_v16 = vld [vmem:[#allocation8 + $0xb0] ss:$8 sps:$4 sm:$0xff]   ;;  %v480_v61 = vrot.slane %v471_v58, %v1428_v62 }
  0x73   :  { %p1265_p2 = pnand %p1264_p1, %p1258_p12 }
  0x74   :  { %650 = vmatpush1.bf16.msra.mxu0 %v1068_v43 }
  0x75   :  { %403 = vmatpush1.bf16.msra.mxu1 %v1031_v17  ;;  %651 = vmatprep.subr.bf16.mxu0 %v1073_v44  ;;  %v1097_v17 = vld [vmem:[#allocation8 + $0xc4] ss:$8 sps:$4 sm:$0xff]  }
  0x76   :  { %404 = vmatprep.subr.bf16.mxu1 %v1032_v18  ;;  %v1095_v18 = vld [vmem:[#allocation8 + $0xc0] ss:$8 sps:$4 sm:$0xff]  }
  0x78   :  { %652 = vmatpush1.bf16.msra.mxu0 %v1071_v45 }
  0x79   :  { %405 = vmatpush1.bf16.msra.mxu1 %v1034_v19  ;;  %653 = vmatprep.subr.bf16.mxu0 %v1076_v46  ;;  %v1098_v19 = vld [vmem:[#allocation8 + $0xd0] ss:$8 sps:$4 sm:$0xff]  }
  0x7a   :  { %406 = vmatprep.subr.bf16.mxu1 %v1035_v20  ;;  %v1100_v20 = vld [vmem:[#allocation8 + $0xd4] ss:$8 sps:$4 sm:$0xff]  }
  0x7c   :  { %654 = vmatpush1.bf16.msra.mxu0 %v1074_v47 }
  0x7d   :  { %407 = vmatpush1.bf16.msra.mxu1 %v1037_v21  ;;  %655 = vmatprep.subr.bf16.mxu0 %v1079_v48  ;;  %v1103_v21 = vld [vmem:[#allocation8 + $0xe4] ss:$8 sps:$4 sm:$0xff]   ;;  %v1113_v48 = vld [vmem:[#allocation10 + $0x58] sm:$0xff]  }
  0x7e   :  { %408 = vmatprep.subr.bf16.mxu1 %v1038_v22  ;;  %v1101_v22 = vld [vmem:[#allocation8 + $0xe0] ss:$8 sps:$4 sm:$0xff]  }
  0x80   :  { %656 = vmatpush1.bf16.msra.mxu0 %v1077_v49  ;;  %v1114_v49 = vld [vmem:[#allocation10 + $0x18] sm:$0xff]  }
  0x81   :  { %409 = vmatpush1.bf16.msra.mxu1 %v1040_v23  ;;  %657 = vmatprep.subr.bf16.mxu0 %v1082_v50  ;;  %v1106_v23 = vld [vmem:[#allocation8 + $0xf4] ss:$8 sps:$4 sm:$0xff]   ;;  %v1115_v50 = vld [vmem:[#allocation10 + $0x60] sm:$0xff]  }
  0x82   :  { %410 = vmatprep.subr.bf16.mxu1 %v1041_v24  ;;  %v1104_v24 = vld [vmem:[#allocation8 + $0xf0] ss:$8 sps:$4 sm:$0xff]  }
  0x84   :  { %658 = vmatpush1.bf16.msra.mxu0 %v1080_v51  ;;  %v1116_v51 = vld [vmem:[#allocation10 + $0x20] sm:$0xff]  }
  0x85   :  { %411 = vmatpush1.bf16.msra.mxu1 %v1043_v25  ;;  %659 = vmatprep.subr.bf16.mxu0 %v1085_v52  ;;  %v1107_v25 = vld [vmem:[#allocation10 + $0x40] sm:$0xff]   ;;  %v1117_v52 = vld [vmem:[#allocation10 + $0x68] sm:$0xff]  }
  0x86   :  { %412 = vmatprep.subr.bf16.mxu1 %v1044_v26  ;;  %v1108_v26 = vld [vmem:[#allocation10] sm:$0xff]  }
  0x88   :  { %660 = vmatpush1.bf16.msra.mxu0 %v1083_v53  ;;  %v1118_v53 = vld [vmem:[#allocation10 + $0x28] sm:$0xff]  }
  0x89   :  { %413 = vmatpush1.bf16.msra.mxu1 %v1046_v27  ;;  %661 = vmatprep.subr.bf16.mxu0 %v1088_v54  ;;  %v1109_v27 = vld [vmem:[#allocation10 + $0x48] sm:$0xff]   ;;  %v1119_v54 = vld [vmem:[#allocation10 + $0x70] sm:$0xff]  }
  0x8a   :  { %414 = vmatprep.subr.bf16.mxu1 %v1047_v28  ;;  %v1110_v28 = vld [vmem:[#allocation10 + $0x8] sm:$0xff]  }
  0x8c   :  { %662 = vmatpush1.bf16.msra.mxu0 %v1086_v55  ;;  %v1120_v55 = vld [vmem:[#allocation10 + $0x30] sm:$0xff]  }
  0x8d   :  { %415 = vmatpush1.bf16.msra.mxu1 %v1049_v29  ;;  %663 = vmatprep.subr.bf16.mxu0 %v1091_v56  ;;  %v1111_v29 = vld [vmem:[#allocation10 + $0x50] sm:$0xff]   ;;  %v1121_v56 = vld [vmem:[#allocation10 + $0x78] sm:$0xff]  }
  0x8e   :  { %416 = vmatprep.subr.bf16.mxu1 %v1050_v30  ;;  %v1112_v30 = vld [vmem:[#allocation10 + $0x10] sm:$0xff]  }
  0x90   :  { %664 = vmatpush1.bf16.msra.mxu0 %v1089_v57  ;;  %v1122_v57 = vld [vmem:[#allocation10 + $0x38] sm:$0xff]  }
  0x91   :  { %417 = vmatpush1.bf16.msra.mxu1 %v1052_v31  ;;  %665 = vmatprep.subr.bf16.mxu0 %v1094_v15  ;;  %v218_v31 = vld [vmem:[%s1464_s4] sm:$0x3] }
  0x92   :  { %418 = vmatprep.subr.bf16.mxu1 %v1053_v32  ;;  %v223_v32 = vrot.slane %v218_v31, %v1423_v60 }
  0x94   :  { %666 = vmatpush1.bf16.msra.mxu0 %v1092_v16 }
  0x95   :  { %419 = vmatpush1.bf16.msra.mxu1 %v1055_v33  ;;  %667 = vmatprep.subr.bf16.mxu0 %v1097_v17  ;;  %v227_v33 = vrot.slane %v218_v31, %v1428_v62 }
  0x96   :  { %420 = vmatprep.subr.bf16.mxu1 %v1056_v34 }
  0x98   :  { %668 = vmatpush1.bf16.msra.mxu0 %v1095_v18 }
  0x99   :  { %421 = vmatpush1.bf16.msra.mxu1 %v1058_v35  ;;  %669 = vmatprep.subr.bf16.mxu0 %v1100_v20 }
  0x9a   :  { %974 = vmatprep.subr.bf16.mxu1 %v1107_v25 }
  0x9c   :  { %670 = vmatpush1.bf16.msra.mxu0 %v1098_v19 }
  0x9d   :  { %671 = vmatprep.subr.bf16.mxu0 %v1103_v21 }
  0xa0   :  { %672 = vmatpush1.bf16.msra.mxu0 %v1101_v22 }
  0xa1   :  { %673 = vmatprep.subr.bf16.mxu0 %v1106_v23 }
  0xa4   :  { %674 = vmatpush1.bf16.msra.mxu0 %v1104_v24 }
 0x132   :  { %v171_v1 = vpop.f32.mrb[0].mxu0 }
 0x133   :  { %v172_v2 = vadd.f32 %v171_v1, %v111_v63  ;;  %v173_v3 = vpop.f32.mrb[1].mxu0 }
 0x134   :  { %v174_v4 = vadd.f32 %v173_v3, %v115_v0  ;;  %v175_v5 = vpop.f32.mrb[2].mxu0 }
 0x135   :  { %1123 = vtanh.f32 %v172_v2  ;;  %v176_v6 = vadd.f32 %v175_v5, %v111_v63  ;;  %v177_v7 = vpop.f32.mrb[3].mxu0 }
 0x136   :  { %1125 = vtanh.f32 %v174_v4  ;;  %v178_v8 = vadd.f32 %v177_v7, %v115_v0 }
 0x137   :  { %1127 = vtanh.f32 %v176_v6 }
 0x138   :  { %1129 = vtanh.f32 %v178_v8 }
 0x13f   :  { %v1124_v9 = vpop.eup %1123 }
 0x140   :  { %v1126_v10 = vpop.eup %1125 }
 0x141   :  { %v1128_v11 = vpop.eup %1127 }
 0x142   :  { %v1130_v12 = vpop.eup %1129  ;;  %v184_v13 = vpack.c.bf16 %v1128_v11, %v1124_v9 }
 0x143   :  { %v185_v14 = vpack.c.bf16 %v1130_v12, %v1126_v10  ;;  %v957_v12 = vld [vmem:[%s1468_s8] ss:$0 sm:$0xff] }
 0x145   :  { %422 = vmatprep.mubr.bf16.mxu1 %v185_v14 }
 0x146   :  { %423 = vmatmul.mubr.bf16.vlgmr.msra.gmra.mrb[0].mxu1 %v184_v13 }
 0x147   :  { %975 = vmatpush3.bf16.msra.mxu1 %v1108_v26 }
 0x148   :  { %976 = vmatprep.subr.bf16.mxu1 %v1109_v27 }
 0x14b   :  { %977 = vmatpush3.bf16.msra.mxu1 %v1110_v28 }
 0x14c   :  { %978 = vmatprep.subr.bf16.mxu1 %v1111_v29 }
 0x14f   :  { %979 = vmatpush3.bf16.msra.mxu1 %v1112_v30 }
 0x150   :  { %980 = vmatprep.subr.bf16.mxu1 %v1113_v48 }
 0x153   :  { %981 = vmatpush3.bf16.msra.mxu1 %v1114_v49 }
 0x154   :  { %982 = vmatprep.subr.bf16.mxu1 %v1115_v50 }
 0x157   :  { %983 = vmatpush3.bf16.msra.mxu1 %v1116_v51 }
 0x158   :  { %984 = vmatprep.subr.bf16.mxu1 %v1117_v52 }
 0x15b   :  { %985 = vmatpush3.bf16.msra.mxu1 %v1118_v53 }
 0x15c   :  { %986 = vmatprep.subr.bf16.mxu1 %v1119_v54 }
 0x15f   :  { %987 = vmatpush3.bf16.msra.mxu1 %v1120_v55 }
 0x160   :  { %988 = vmatprep.subr.bf16.mxu1 %v1121_v56 }
 0x163   :  { %989 = vmatpush3.bf16.msra.mxu1 %v1122_v57 }
 0x219   :  { %v424_v34 = vpop.f32.mrb[0].mxu1 }
 0x21a   :  { %v425_v35 = vadd.f32 %v424_v34, %v223_v32  ;;  %v426_v36 = vpop.f32.mrb[1].mxu1 }
 0x21b   :  { %v427_v37 = vadd.f32 %v426_v36, %v227_v33  ;;  %v428_v38 = vpop.f32.mrb[2].mxu1 }
 0x21c   :  { %1131 = vtanh.f32 %v425_v35  ;;  %v429_v39 = vadd.f32 %v428_v38, %v223_v32  ;;  %v430_v40 = vpop.f32.mrb[3].mxu1 }
 0x21d   :  { %1133 = vtanh.f32 %v427_v37  ;;  %v431_v41 = vadd.f32 %v430_v40, %v227_v33 }
 0x21e   :  { %1135 = vtanh.f32 %v429_v39 }
 0x21f   :  { %1137 = vtanh.f32 %v431_v41 }
 0x226   :  { %v1132_v42 = vpop.eup %1131 }
 0x227   :  { %v1134_v43 = vpop.eup %1133 }
 0x228   :  { %v1136_v44 = vpop.eup %1135 }
 0x229   :  { %v1138_v45 = vpop.eup %1137  ;;  %v437_v46 = vpack.c.bf16 %v1136_v44, %v1132_v42 }
 0x22a   :  { %v438_v47 = vpack.c.bf16 %v1138_v45, %v1134_v43 }
 0x22c   :  { %675 = vmatprep.mubr.bf16.mxu0 %v438_v47 }
 0x22d   :  { %676 = vmatmul.mubr.bf16.vlgmr.msra.gmra.mrb[4].mxu0 %v437_v46 }
 0x300   :  { %v677_v63 = vpop.f32.mrb[4].mxu0 }
 0x301   :  { %v678_v0 = vadd.f32 %v677_v63, %v476_v59  ;;  %v679_v1 = vpop.f32.mrb[5].mxu0 }
 0x302   :  { %v680_v2 = vadd.f32 %v679_v1, %v480_v61  ;;  %v681_v3 = vpop.f32.mrb[6].mxu0 }
 0x303   :  { %1139 = vtanh.f32 %v678_v0  ;;  %v682_v4 = vadd.f32 %v681_v3, %v476_v59  ;;  %v683_v5 = vpop.f32.mrb[7].mxu0 }
 0x304   :  { %1141 = vtanh.f32 %v680_v2  ;;  %v684_v6 = vadd.f32 %v683_v5, %v480_v61 }
 0x305   :  { %1143 = vtanh.f32 %v682_v4 }
 0x306   :  { %1145 = vtanh.f32 %v684_v6 }
 0x30d   :  { %v1140_v7 = vpop.eup %1139 }
 0x30e   :  { %v1142_v8 = vpop.eup %1141 }
 0x30f   :  { %v1144_v9 = vpop.eup %1143 }
 0x310   :  { %v1146_v10 = vpop.eup %1145  ;;  %v690_v11 = vpack.c.bf16 %v1144_v9, %v1140_v7 }
 0x311   :  { %v691_v60 = vpack.c.bf16 %v1146_v10, %v1142_v8 }
 0x313   :  { %859 = vmatprep.mubr.bf16.mxu1 %v691_v60 }
 0x314   :  { %860 = vmatmul.mubr.bf16.vlgmr.msra.gmra.mrb[4].mxu1 %v690_v11 }
 0x3e7   :  { %v990_v62 = vpop.f32.mrb[4].mxu1 }
 0x3e8   :  { %v991_v13 = vpop.f32.mrb[5].mxu1 }
 0x3e9   :  { %v992_v14 = vadd.f32 %v991_v13, %v990_v62  ;;  %v993_v15 = vpop.f32.mrb[6].mxu1 }
 0x3ea   :  { %v994_v16 = vpop.f32.mrb[7].mxu1 }
 0x3eb   :  { %v862_v17 = vadd.f32 %v992_v14, %v957_v12  ;;  %v995_v18 = vadd.f32 %v994_v16, %v993_v15 }
 0x3ed   :  { %868 = vst [vmem:[#allocation11] sm:$0xff] %v862_v17  ;;  %v865_v19 = vadd.f32 %v995_v18, %v957_v12 }
 0x3ef   :  { %869 = vst [vmem:[#allocation11 + $0x8] sm:$0xff] %v865_v19 }
 0x3f0   :  { %1268 = shalt.err (!%p1265_p2)
}
 0x3f1   :  { %s1269_s16 = scalar_lea.hbm %s1469_s9, 256 }
 0x3f2   :  { %p1270_p3 = scmp.ne.s32.totalorder %s1469_s9, %s1269_s16  ;;  %p1273_p4 = scmp.lt.u32.totalorder %s1269_s16, %s1469_s9 }
 0x3f4   :  { %p1275_p5 = pnand %p1273_p4, %p1270_p3 }
 0x3f6   :  { %1278 = shalt.err (!%p1275_p5)
}
 0x3f7   :  { %881 = dma.vmem_to_hbm [thread:$0]  %s876_s10, 256, %s1469_s9, [#allocation4], %s1288_s19, %s1288_s19, %s1289_s20  }
 0x3f8   :  { %1285 = dma.done.wait [#allocation4], 256  }
 0x3f9   :  { %1286 = vsyncadd [#allocation4], 4294967040 }
 0x3fa   :  { %885 = vsyncpa [#allocation3], 1 }
 0x3fb   :  { %886 = vsyncpa [#allocation6], 1 }
 0x3fc   :  { %887 = vsyncpa [#allocation9], 1 }
 0x3fd   :  { %888 = vsyncpa [#allocation4], 1 }

</bundles_post_ra>
